<compile_context>
chip_gen: v5e
topology: v5e:2x2
jax: 0.10.0
libtpu: 0.0.40
codegen_flags: <defaults>
</compile_context>

<pallas_src>
import jax
import jax.numpy as jnp
from jax.experimental import pallas as pl
from jax.experimental.pallas import tpu as pltpu


def linear_kernel(x_ref, w_ref, b_ref, o_ref):
    """y = x @ W^T + b, lowered as an unrolled K=3 VPU multiply-accumulate."""
    x = x_ref[...].astype(jnp.float32)   # (TM_or_B, 3)
    w = w_ref[...].astype(jnp.float32)   # (3, 4)
    b = b_ref[...].astype(jnp.float32)   # (1, 4)
    # Static unroll over the K=3 contraction: pure VPU broadcast FMAs, no MXU.
    acc = b + x[:, 0:1] * w[0:1, :]
    acc = acc + x[:, 1:2] * w[1:2, :]
    acc = acc + x[:, 2:3] * w[2:3, :]
    o_ref[...] = acc.astype(o_ref.dtype)


def testnet_forward(x, w_t, b, *, tm=512):
    """TestNet forward: y = x @ W^T + b.

    x:   (B, in_features)
    w_t: (in_features, out_features)   (PyTorch weight, transposed)
    b:   (out_features,)
    """
    B, in_f = x.shape
    out_f = w_t.shape[1]
    b2d = b.reshape(1, out_f)

    if B <= tm:
        # Tiny-batch fast path: no grid, no pipeline machinery.  One kernel
        # invocation; all operands are whole blocks resident in VMEM.
        return pl.pallas_call(
            linear_kernel,
            out_shape=jax.ShapeDtypeStruct((B, out_f), x.dtype),
        )(x, w_t, b2d)

    # Large-batch path: grid over the batch (M) axis only.  Weight and bias
    # stay resident (same (0, 0) block each step); the axis is "parallel" so
    # both v7x TensorCores can take half of the batch.
    bp = ((B + tm - 1) // tm) * tm
    xp = x if bp == B else jnp.pad(x, ((0, bp - B), (0, 0)))
    out = pl.pallas_call(
        linear_kernel,
        out_shape=jax.ShapeDtypeStruct((bp, out_f), x.dtype),
        grid=(bp // tm,),
        in_specs=[
            pl.BlockSpec((tm, in_f), lambda i: (i, 0)),
            pl.BlockSpec((in_f, out_f), lambda i: (0, 0)),  # resident weight
            pl.BlockSpec((1, out_f), lambda i: (0, 0)),     # resident bias
        ],
        out_specs=pl.BlockSpec((tm, out_f), lambda i: (i, 0)),
        compiler_params=pltpu.CompilerParams(
            dimension_semantics=("parallel",)
        ),
    )(xp, w_t, b2d)
    return out[:B] if bp != B else out


if __name__ == "__main__":
    key = jax.random.PRNGKey(0)
    k_x, k_w, k_b, k_xl = jax.random.split(key, 4)

    in_features, out_features = 3, 4

    # PyTorch default Linear init: uniform(-1/sqrt(in), 1/sqrt(in)).
    bound = 1.0 / (in_features ** 0.5)
    weight = jax.random.uniform(
        k_w, (out_features, in_features), jnp.float32, -bound, bound
    )  # PyTorch stores weight as (out, in)
    bias = jax.random.uniform(k_b, (out_features,), jnp.float32, -bound, bound)

    # --- tiny batch (the module's natural scale): grid-free path -----------
    batch = 8
    x = jax.random.normal(k_x, (batch, in_features), jnp.float32)
    y = jax.block_until_ready(testnet_forward(x, weight.T, bias))
    y_ref = x @ weight.T + bias
    assert y.shape == (batch, out_features)
    assert jnp.allclose(y, y_ref, atol=1e-5, rtol=1e-5)

    # --- larger batch: M-gridded path (resident W/b, "parallel" axis) ------
    batch_l = 1000  # not a multiple of the tile -> also exercises padding
    x_l = jax.random.normal(k_xl, (batch_l, in_features), jnp.float32)
    y_l = jax.block_until_ready(testnet_forward(x_l, weight.T, bias, tm=256))
    y_l_ref = x_l @ weight.T + bias
    assert y_l.shape == (batch_l, out_features)
    assert jnp.allclose(y_l, y_l_ref, atol=1e-5, rtol=1e-5)

    print("KERNEL_OK")
</pallas_src>

<mosaic_0001>
module attributes {stable_mosaic.version = 11 : i64} {
  func.func @linear_kernel(%arg0: memref<8x3xf32, #tpu.memory_space<vmem>>, %arg1: memref<3x4xf32, #tpu.memory_space<vmem>>, %arg2: memref<1x4xf32, #tpu.memory_space<vmem>>, %arg3: memref<8x4xf32, #tpu.memory_space<vmem>>) attributes {dimension_semantics = [], scalar_prefetch = 0 : i64, scratch_operands = 0 : i64, tpu.core_type = #tpu.core_type<tc>} {
    %c0 = arith.constant 0 : index
    %c0_0 = arith.constant 0 : index
    %0 = vector.load %arg0[%c0, %c0_0] : memref<8x3xf32, #tpu.memory_space<vmem>>, vector<8x3xf32>
    %c0_1 = arith.constant 0 : index
    %c0_2 = arith.constant 0 : index
    %1 = vector.load %arg1[%c0_1, %c0_2] : memref<3x4xf32, #tpu.memory_space<vmem>>, vector<3x4xf32>
    %c0_3 = arith.constant 0 : index
    %c0_4 = arith.constant 0 : index
    %2 = vector.load %arg2[%c0_3, %c0_4] : memref<1x4xf32, #tpu.memory_space<vmem>>, vector<1x4xf32>
    %3 = vector.extract_strided_slice %0 {offsets = [0, 0], sizes = [8, 1], strides = [1, 1]} : vector<8x3xf32> to vector<8x1xf32>
    %4 = vector.extract_strided_slice %1 {offsets = [0, 0], sizes = [1, 4], strides = [1, 1]} : vector<3x4xf32> to vector<1x4xf32>
    %5 = vector.broadcast %3 : vector<8x1xf32> to vector<8x4xf32>
    %6 = vector.broadcast %4 : vector<1x4xf32> to vector<8x4xf32>
    %7 = arith.mulf %5, %6 : vector<8x4xf32>
    %8 = vector.broadcast %2 : vector<1x4xf32> to vector<8x4xf32>
    %9 = arith.addf %8, %7 : vector<8x4xf32>
    %10 = vector.extract_strided_slice %0 {offsets = [0, 1], sizes = [8, 1], strides = [1, 1]} : vector<8x3xf32> to vector<8x1xf32>
    %11 = vector.extract_strided_slice %1 {offsets = [1, 0], sizes = [1, 4], strides = [1, 1]} : vector<3x4xf32> to vector<1x4xf32>
    %12 = vector.broadcast %10 : vector<8x1xf32> to vector<8x4xf32>
    %13 = vector.broadcast %11 : vector<1x4xf32> to vector<8x4xf32>
    %14 = arith.mulf %12, %13 : vector<8x4xf32>
    %15 = arith.addf %9, %14 : vector<8x4xf32>
    %16 = vector.extract_strided_slice %0 {offsets = [0, 2], sizes = [8, 1], strides = [1, 1]} : vector<8x3xf32> to vector<8x1xf32>
    %17 = vector.extract_strided_slice %1 {offsets = [2, 0], sizes = [1, 4], strides = [1, 1]} : vector<3x4xf32> to vector<1x4xf32>
    %18 = vector.broadcast %16 : vector<8x1xf32> to vector<8x4xf32>
    %19 = vector.broadcast %17 : vector<1x4xf32> to vector<8x4xf32>
    %20 = arith.mulf %18, %19 : vector<8x4xf32>
    %21 = arith.addf %15, %20 : vector<8x4xf32>
    %c0_5 = arith.constant 0 : index
    %c0_6 = arith.constant 0 : index
    %22 = vector.load %arg3[%c0_5, %c0_6] : memref<8x4xf32, #tpu.memory_space<vmem>>, vector<8x4xf32>
    tpu.vector_store %arg3[%c0_5, %c0_6], %21 {strides = array<i32>} : memref<8x4xf32, #tpu.memory_space<vmem>>, vector<8x4xf32>,
    return
  }
}

</mosaic_0001>

<bundles_post_ra>
// kernel: tpu_custom_call.1
= control target key start
LH: loop header
LB: loop body
LE: loop exit
PB: predicated region body
PF: predicated region fallthrough
CT: control target
= control target key end

     0   :  { %v56_v0 = vmov 0   ;;  %v57_v2 = vmov 2   ;;  %v58_v3 = vmov 1   ;;  %vm42_vm0 = vcmask 31744   ;;  %s91_s0 = inlined_call_operand.vmem [shape: f32[8,3], index: 0, kind: input, shape index: {}]   ;;  %s92_s2 = inlined_call_operand.vmem [shape: f32[1,4], index: 2, kind: input, shape index: {}]   ;;  %s93_s1 = inlined_call_operand.vmem [shape: f32[3,4], index: 1, kind: input, shape index: {}]   ;;  %s94_s3 = inlined_call_operand.vmem [shape: f32[8,4], index: 3, kind: output, shape index: {}]  }
   0x1   :  { %51 = vset.pattern.permute.xlu0 %v56_v0  ;;  %v14_v1 = vld [vmem:[%s91_s0] sm:$0xff]  ;;  %53 = vset.pattern.permute.xlu1 %v57_v2 }
   0x2   :  { %19 = vperm.xlu0 %51, %v14_v1   ;;  %36 = vperm.xlu1 %53, %v14_v1   ;;  %v15_v4 = vld [vmem:[%s93_s1] sm:$0x7] }
   0x3   :  { %v22_v6 = vperm.slane %v15_v4, 0  ;;  %v55_v7 = vld [vmem:[%s92_s2] ss:$0 sm:$0xff]  ;;  %v32_v9 = vperm.slane %v15_v4, 1  ;;  %v39_v10 = vperm.slane %v15_v4, 2 }
   0xa   :  { %52 = vset.pattern.permute.xlu0 %v58_v3 }
   0xb   :  { %29 = vperm.xlu0 %52, %v14_v1  }
  0x13   :  { %54 = vset.pattern.permute.xlu0 %v57_v2 }
  0x74   :  { %v20_v5 = vpop.permute.xlu0 %19  ;;  %v37_v11 = vpop.permute.xlu1 %36 }
  0x75   :  { %v23_v8 = vmul.f32 %v22_v6, %v20_v5  ;;  %v40_v15 = vmul.f32 %v39_v10, %v37_v11 }
  0x77   :  { %v27_v13 = vadd.f32 %v55_v7, %v23_v8 }
  0x7d   :  { %v30_v12 = vpop.permute.xlu0 %29 }
  0x7e   :  { %v33_v14 = vmul.f32 %v32_v9, %v30_v12 }
  0x80   :  { %v34_v16 = vadd.f32 %v33_v14, %v27_v13 }
  0x82   :  { %v41_v17 = vadd.f32 %v40_v15, %v34_v16 }
  0x84   :  { %43 = vst.msk [vmem:[%s94_s3] sm:$0xff] %vm42_vm0, %v41_v17 }

</bundles_post_ra>
